<compile_context>
chip_gen: v5e
topology: v5e:2x2
jax: 0.10.0
libtpu: 0.0.40
codegen_flags: <defaults>
</compile_context>

<pallas_src>
import functools
import math

import jax
import jax.numpy as jnp
from jax.experimental import pallas as pl
from jax.experimental.pallas import tpu as pltpu


def _pick_row_tile(h, c, w, max_block_bytes=6 * 1024 * 1024):
    """Largest legal row tile (sublane dim) whose logits block fits the budget.

    Legal second-to-last block dims: th % 8 == 0, or th == h (full dim).
    """
    legal = [d for d in range(1, h + 1) if h % d == 0 and (d % 8 == 0 or d == h)]
    per_row_bytes = c * w * 4
    fit = [d for d in legal if d * per_row_bytes <= max_block_bytes]
    if fit:
        return max(fit)
    # TODO(synk): for extreme C*W even the smallest legal row tile overflows the
    # per-block budget; the W axis would also need tiling in that case.
    return min(legal)


def _nll_kernel(x_ref, t_ref, nll_ref, *, ignore_index):
    """Per-pixel -log softmax prob of the target class for one (image, row-tile).

    x_ref   : (C, TH, W) logits
    t_ref   : (TH, W)    int32 raw labels (may equal ignore_index)
    nll_ref : (TH, W)    f32 -log p_target; 0.0 (== -log 1) for ignored pixels
    """
    x = x_ref[...].astype(jnp.float32)
    t = t_ref[...]
    valid = t != ignore_index
    t_cls = jnp.where(valid, t, 0)

    # Numerically-stable log-sum-exp over the class axis (leading dim ->
    # elementwise VPU accumulation across C dense (TH, W) tiles).
    m = jnp.max(x, axis=0, keepdims=True)                      # (1, TH, W)
    s = jnp.sum(jnp.exp(x - m), axis=0, keepdims=True)         # (1, TH, W)

    # Gather x[target, pixel] via a one-hot sum over the class axis
    # (pure VPU compare/select; no per-lane dynamic gather).
    cls = jax.lax.broadcasted_iota(jnp.int32, x.shape, 0)
    x_t = jnp.sum(jnp.where(cls == t_cls[None], x, 0.0), axis=0, keepdims=True)

    nll = jnp.log(s) - (x_t - m)                               # (1, TH, W)
    # Ignored pixels get nll = 0 (== -log 1) so they never rank among the
    # k hardest examples in the wrapper's top-k.
    nll_ref[...] = jnp.where(valid, nll[0], 0.0)


def _per_pixel_nll(pred, target, ignore_index):
    """Pallas pass: per-pixel -log p_target, shape (b, h, w) float32."""
    b, c, h, w = pred.shape
    th = _pick_row_tile(h, c, w)
    grid = (b, h // th)

    logits_block = c * th * w * 4
    pix_block = th * w * 4
    # 2x double-buffered logits + ~4x elementwise temps + label/output blocks.
    est = 6 * logits_block + 10 * pix_block
    vmem_limit = int(min(48 * 1024 * 1024, max(32 * 1024 * 1024, 1.3 * est)))

    return pl.pallas_call(
        functools.partial(_nll_kernel, ignore_index=ignore_index),
        out_shape=jax.ShapeDtypeStruct((b, h, w), jnp.float32),
        grid_spec=pl.GridSpec(
            grid=grid,
            in_specs=[
                # (1, c, th, w) block, batch dim squeezed -> kernel sees (c, th, w)
                pl.BlockSpec((None, c, th, w), lambda bi, ti: (bi, 0, ti, 0)),
                pl.BlockSpec((None, th, w), lambda bi, ti: (bi, ti, 0)),
            ],
            out_specs=pl.BlockSpec((None, th, w), lambda bi, ti: (bi, ti, 0)),
        ),
        compiler_params=pltpu.CompilerParams(
            dimension_semantics=("parallel", "parallel"),
            vmem_limit_bytes=vmem_limit,
        ),
    )(pred, target.astype(jnp.int32))


def ohem_cross_entropy_2d(pred, target, *, ignore_index=255, thresh=0.7,
                          min_kept=256):
    """Forward of OhemCrossEntropy2dTensor (use_weight=False)."""
    # TODO(synk): use_weight=True variant (hard-coded 2-class weights) not implemented.
    b, c, h, w = pred.shape
    n = b * h * w

    nll = _per_pixel_nll(pred, target, ignore_index).reshape(n)
    t_flat = target.reshape(n).astype(jnp.int32)
    valid = t_flat != ignore_index
    num_valid = jnp.sum(valid.astype(jnp.int32))

    # OHEM thresholding in nll space:
    #   prob <= thresh       <=>  nll >= -log(thresh)
    #   k-th smallest prob   <=>  k-th largest nll
    nll_thresh = jnp.float32(-math.log(thresh))
    if min_kept > 0:
        k = min(n, int(min_kept))
        kth_nll = jax.lax.top_k(nll, k)[0][k - 1]
        nll_thresh = jnp.minimum(nll_thresh, kth_nll)

    kept_ohem = valid & (nll >= nll_thresh)
    do_ohem = jnp.logical_and(num_valid >= min_kept, num_valid > 0)
    kept = jnp.where(do_ohem, kept_ohem, valid)

    kept_f = kept.astype(jnp.float32)
    # CrossEntropyLoss(reduction='mean', ignore_index=...) over the kept pixels.
    return jnp.sum(nll * kept_f) / jnp.sum(kept_f)


def _reference(pred, target, ignore_index, thresh, min_kept):
    """Pure-JAX replica of the PyTorch forward (correctness check only)."""
    b, c, h, w = pred.shape
    n = b * h * w
    logits = jnp.transpose(pred, (1, 0, 2, 3)).reshape(c, n)
    t = target.reshape(n).astype(jnp.int32)
    valid = t != ignore_index
    t0 = jnp.where(valid, t, 0)
    logp = jax.nn.log_softmax(logits, axis=0)
    logp_t = jnp.take_along_axis(logp, t0[None, :], axis=0)[0]
    prob_t = jnp.where(valid, jnp.exp(logp_t), 1.0)
    num_valid = jnp.sum(valid.astype(jnp.int32))
    threshold = jnp.float32(thresh)
    if min_kept > 0:
        kth = jnp.sort(prob_t)[min(n, int(min_kept)) - 1]
        threshold = jnp.maximum(threshold, kth)
    kept = jnp.where(jnp.logical_and(num_valid >= min_kept, num_valid > 0),
                     valid & (prob_t <= threshold), valid)
    kf = kept.astype(jnp.float32)
    return jnp.sum((-logp_t) * kf) / jnp.sum(kf)


if __name__ == "__main__":
    key = jax.random.PRNGKey(0)
    k1, k2, k3 = jax.random.split(key, 3)

    ignore_index, thresh, min_kept = 255, 0.7, 256

    # Module-implied shapes: pred [b, c, h, w] logits, target [b, h, w] labels
    # with some pixels set to ignore_index.
    b, c, h, w = 2, 4, 16, 16
    pred = jax.random.normal(k1, (b, c, h, w), dtype=jnp.float32)
    target = jax.random.randint(k2, (b, h, w), 0, c, dtype=jnp.int32)
    ignore_mask = jax.random.uniform(k3, (b, h, w)) > 0.88
    target = jnp.where(ignore_mask, ignore_index, target)

    loss = jax.block_until_ready(
        ohem_cross_entropy_2d(pred, target, ignore_index=ignore_index,
                              thresh=thresh, min_kept=min_kept))

    ref = _reference(pred, target, ignore_index, thresh, min_kept)
    assert jnp.isfinite(loss), loss
    assert jnp.allclose(loss, ref, rtol=1e-4, atol=1e-5), (loss, ref)

    print("KERNEL_OK")
</pallas_src>

<mosaic_0001>
module attributes {stable_mosaic.version = 11 : i64} {
  func.func @_nll_kernel(%arg0: i32, %arg1: i32, %arg2: memref<1x4x16x16xf32, #tpu.memory_space<vmem>>, %arg3: memref<1x16x16xi32, #tpu.memory_space<vmem>>, %arg4: memref<1x16x16xf32, #tpu.memory_space<vmem>>) attributes {dimension_semantics = [#tpu.dimension_semantics<parallel>, #tpu.dimension_semantics<parallel>], iteration_bounds = array<i64: 2, 1>, scalar_prefetch = 0 : i64, scratch_operands = 0 : i64, tpu.core_type = #tpu.core_type<tc>, window_params = [{transform_indices = @transform_0, window_bounds = array<i64: 1, 4, 16, 16>}, {transform_indices = @transform_1, window_bounds = array<i64: 1, 16, 16>}, {transform_indices = @transform_2, window_bounds = array<i64: 1, 16, 16>}]} {
    %c0 = arith.constant 0 : index
    %c0_0 = arith.constant 0 : index
    %c0_1 = arith.constant 0 : index
    %c0_2 = arith.constant 0 : index
    %0 = vector.load %arg2[%c0, %c0_0, %c0_1, %c0_2] : memref<1x4x16x16xf32, #tpu.memory_space<vmem>>, vector<1x4x16x16xf32>
    %1 = vector.shape_cast %0 : vector<1x4x16x16xf32> to vector<4x16x16xf32>
    %c0_3 = arith.constant 0 : index
    %c0_4 = arith.constant 0 : index
    %c0_5 = arith.constant 0 : index
    %2 = vector.load %arg3[%c0_3, %c0_4, %c0_5] : memref<1x16x16xi32, #tpu.memory_space<vmem>>, vector<1x16x16xi32>
    %3 = vector.shape_cast %2 : vector<1x16x16xi32> to vector<16x16xi32>
    %c255_i32 = arith.constant 255 : i32
    %4 = vector.broadcast %c255_i32 : i32 to vector<16x16xi32>
    %5 = arith.cmpi ne, %3, %4 : vector<16x16xi32>
    %c0_i32 = arith.constant 0 : i32
    %6 = vector.broadcast %c0_i32 : i32 to vector<16x16xi32>
    %7 = arith.select %5, %3, %6 : vector<16x16xi1>, vector<16x16xi32>
    %cst = arith.constant dense<0xFF800000> : vector<16x16xf32>
    %8 = vector.multi_reduction <maximumf>, %1, %cst [0] : vector<4x16x16xf32> to vector<16x16xf32>
    %9 = vector.shape_cast %8 : vector<16x16xf32> to vector<1x16x16xf32>
    %10 = vector.broadcast %9 : vector<1x16x16xf32> to vector<4x16x16xf32>
    %11 = arith.subf %1, %10 : vector<4x16x16xf32>
    %12 = math.exp %11 : vector<4x16x16xf32>
    %cst_6 = arith.constant dense<0.000000e+00> : vector<16x16xf32>
    %13 = vector.multi_reduction <add>, %12, %cst_6 [0] : vector<4x16x16xf32> to vector<16x16xf32>
    %14 = vector.shape_cast %13 : vector<16x16xf32> to vector<1x16x16xf32>
    %15 = tpu.iota {dimensions = array<i32: 0>} : vector<4x16x16xi32>
    %16 = vector.shape_cast %7 : vector<16x16xi32> to vector<1x16x16xi32>
    %17 = vector.broadcast %16 : vector<1x16x16xi32> to vector<4x16x16xi32>
    %18 = arith.cmpi eq, %15, %17 : vector<4x16x16xi32>
    %cst_7 = arith.constant 0.000000e+00 : f32
    %19 = vector.broadcast %cst_7 : f32 to vector<4x16x16xf32>
    %20 = arith.select %18, %1, %19 : vector<4x16x16xi1>, vector<4x16x16xf32>
    %cst_8 = arith.constant dense<0.000000e+00> : vector<16x16xf32>
    %21 = vector.multi_reduction <add>, %20, %cst_8 [0] : vector<4x16x16xf32> to vector<16x16xf32>
    %22 = vector.shape_cast %21 : vector<16x16xf32> to vector<1x16x16xf32>
    %23 = math.log %14 : vector<1x16x16xf32>
    %24 = arith.subf %22, %9 : vector<1x16x16xf32>
    %25 = arith.subf %23, %24 : vector<1x16x16xf32>
    %26 = vector.shape_cast %25 : vector<1x16x16xf32> to vector<16x16xf32>
    %cst_9 = arith.constant 0.000000e+00 : f32
    %27 = vector.broadcast %cst_9 : f32 to vector<16x16xf32>
    %28 = arith.select %5, %26, %27 : vector<16x16xi1>, vector<16x16xf32>
    %c0_10 = arith.constant 0 : index
    %c0_11 = arith.constant 0 : index
    %c0_12 = arith.constant 0 : index
    %29 = vector.load %arg4[%c0_10, %c0_11, %c0_12] : memref<1x16x16xf32, #tpu.memory_space<vmem>>, vector<1x16x16xf32>
    %30 = vector.shape_cast %29 : vector<1x16x16xf32> to vector<16x16xf32>
    %31 = vector.shape_cast %28 : vector<16x16xf32> to vector<1x16x16xf32>
    tpu.vector_store %arg4[%c0_10, %c0_11, %c0_12], %31 {strides = array<i32>} : memref<1x16x16xf32, #tpu.memory_space<vmem>>, vector<1x16x16xf32>,
    return
  }
  func.func @transform_0(%arg0: i32, %arg1: i32) -> (i32, i32, i32, i32) {
    %c0_i32 = arith.constant 0 : i32
    %c0_i32_0 = arith.constant 0 : i32
    %c0_i32_1 = arith.constant 0 : i32
    return %arg0, %c0_i32, %arg1, %c0_i32_0 : i32, i32, i32, i32
  }
  func.func @transform_1(%arg0: i32, %arg1: i32) -> (i32, i32, i32) {
    %c0_i32 = arith.constant 0 : i32
    %c0_i32_0 = arith.constant 0 : i32
    return %arg0, %arg1, %c0_i32 : i32, i32, i32
  }
  func.func @transform_2(%arg0: i32, %arg1: i32) -> (i32, i32, i32) {
    %c0_i32 = arith.constant 0 : i32
    %c0_i32_0 = arith.constant 0 : i32
    return %arg0, %arg1, %c0_i32 : i32, i32, i32
  }
}

</mosaic_0001>

<bundles_post_ra>
// kernel: tpu_custom_call.1
= control target key start
LH: loop header
LB: loop body
LE: loop exit
PB: predicated region body
PF: predicated region fallthrough
CT: control target
= control target key end

     0   :  { %7 = vsyncpa [#allocation3], 0  ;;  %s975_s0 = inlined_call_operand.hbm [shape: f32[2,4,16,16], index: 0, kind: input, shape index: {}]   ;;  %s976_s1 = inlined_call_operand.hbm [shape: s32[2,16,16], index: 1, kind: input, shape index: {}]   ;;  %s977_s2 = inlined_call_operand.hbm [shape: f32[2,16,16], index: 2, kind: output, shape index: {}]  }
   0x1   :  { %9 = vsyncpa [#allocation3 + $0x1], 0 }
   0x2   :  { %10 = vsyncpa [#allocation6], 0 }
   0x3   :  { %12 = vsyncpa [#allocation6 + $0x1], 0 }
   0x4   :  { %13 = vsyncpa [#allocation4], 0 }
   0x5   :  { %15 = vsyncpa [#allocation4 + $0x1], 0  ;;  %s751_s9 = smov 0   ;;  %s753_s10 = smov 0  }
   0x6   :  { %s755_s11 = smov 0   ;;  %s757_s12 = smov 0  }
   0x7   :  { %s759_s13 = smov 0   ;;  %s761_s14 = smov 0  }
   0x8 LB: > { %s471_s15 = sadd.s32 4294967295, %s730_s14   ;;  %s472_s16 = sadd.s32 4294967294, %s730_s14   ;;  %s730_s14 = sphi %s761_s14, %s21_s14   ;;  %s726_s13 = sphi %s759_s13, %s987_s13   ;;  %s722_s12 = sphi %s757_s12, %s986_s12   ;;  %s718_s11 = sphi %s755_s11, %s985_s11   ;;  %s714_s10 = sphi %s753_s10, %s984_s10   ;;  %s710_s9 = sphi %s751_s9, %s983_s9  }
   0x9   : > { %s33_s17 = sadd.s32 1, %s726_s13  ;;  %s42_s18 = sadd.s32 1, %s718_s11 }
   0xa   : > { %p35_p0 = scmp.ge.s32.totalorder %s33_s17, 2  ;;  %p49_p1 = scmp.ne.s32.totalorder %s718_s11, %s714_s10 }
   0xb   : > { %p50_p2 = scmp.eq.s32.totalorder %s730_s14, 0  ;;  %p55_p3 = scmp.ne.s32.totalorder %s714_s10, %s710_s9 }
   0xc   : > { %s989_s17 = smov (%p35_p0, %s33_s17), 0  ;;  %p56_p5 = scmp.eq.s32.totalorder %s471_s15, 0 }
   0xd   : > { %p792_p4 = por %p50_p2, %p49_p1  ;;  %s37_s20 = ssub.s32 %s726_s13, %s989_s17 }
   0xe   : > { %p109_p6 = scmp.eq.s32.totalorder %s471_s15, 1  ;;  %p40_p7 = scmp.eq.s32.totalorder %s37_s20, 0 }
   0xf   : > { %p798_p8 = por %p56_p5, %p55_p3  ;;  %p115_p10 = scmp.eq.s32.totalorder %s472_s16, 1 }
  0x10   : > { %p802_p9 = por %p109_p6, %p49_p1  ;;  %p474_p12 = scmp.ge.s32.totalorder %s730_s14, 2 }
  0x11   : > { %s807_s23 = scalar_select %p40_p7, %s718_s11, %s42_s18  }
  0x12   : > { %p809_p11 = por %p115_p10, %p55_p3  ;;  %p510_p13 = scmp.lt.s32.totalorder %s730_s14, 2 }
  0x13   : > { %s816_s25 = sand.u32 1, %s718_s11   ;;  %s490_s27 = sshll.u32 %s726_s13, 6 }
  0x14   : > { %s475_s26 = sshll.u32 %s816_s25, 6  ;;  %s146_s30 = scalar_lea.hbm %s975_s0, %s490_s27 }
  0x15   : > { %s139_s3 = scalar_lea.vmem [#allocation2], %s475_s26  ;;  %s147_s5 = sshll.u32 %s146_s30, 4  ;;  %s148_s5 = int_to_ptr.hbm [resolvable:$true] %s147_s5 }
  0x16   : > { %s149_s4 = sshll.u32 %s139_s3, 4  ;;  %p825_p0 = pnand %p510_p13, %p792_p4  ;;  %s150_s4 = int_to_ptr.vmem [resolvable:$true] %s149_s4 }
  0x17   : > { %p481_p1 = scmp.ge.s32.totalorder %s730_s14, 1  ;;  %s136_s7 = scalar_lea.sflag [#allocation3], %s816_s25 }
  0x18   : > { %s732_s8 = smov 128   ;;  %s733_s15 = smov 8  }
  0x19   : > { %502 = dma.hbm_to_vmem [thread:$0]  (!%p825_p0), %s148_s5, 1024, %s150_s4, %s136_s7, %s732_s8, %s732_s8, %s733_s15  }
  0x1a   : > { %p181_p2 = scmp.lt.s32.totalorder %s730_s14, 3  ;;  %s478_s16 = sshll.u32 %s816_s25, 4 }
  0x1b   : > { %s491_s18 = sshll.u32 %s726_s13, 4  ;;  %s163_s27 = scalar_lea.vmem [#allocation5], %s478_s16 }
  0x1c   : > { %p182_p3 = pnand %p481_p1, %p181_p2  ;;  %s170_s19 = scalar_lea.hbm %s976_s1, %s491_s18 }
  0x1d   : > { %s173_s28 = sshll.u32 %s163_s27, 4  ;;  %s171_s29 = sshll.u32 %s170_s19, 4  ;;  %s174_s28 = int_to_ptr.vmem [resolvable:$true] %s173_s28  ;;  %s172_s29 = int_to_ptr.hbm [resolvable:$true] %s171_s29 }
  0x1e   : > { %s160_s30 = scalar_lea.sflag [#allocation6], %s816_s25  ;;  %185 = sbr.rel (%p182_p3) target bundleno = 85 (0x55), region = 28 }
  0x1f   : > { %505 = dma.hbm_to_vmem [thread:$0]  (!%p825_p0), %s172_s29, 256, %s174_s28, %s160_s30, %s732_s8, %s732_s8, %s733_s15  }
  0x20   : > { %s843_s3 = sand.u32 (!%p182_p3), 1, %s714_s10  }
  0x21   : > { %s482_s4 = sshll.u32 (!%p182_p3), %s843_s3, 6  ;;  %s188_s5 = scalar_lea.sflag (!%p182_p3), [#allocation3], %s843_s3 }
  0x22   : > { %s847_s7 = scalar_lea.vmem (!%p182_p3), [#allocation2], %s482_s4 }
  0x23   : > { %697 = dma.done.wait (%p798_p8), %s188_s5, 1024  }
  0x24   : > { %699 = vsyncadd (%p798_p8), %s188_s5, 4294966272  ;;  %s483_s25 = sshll.u32 %s843_s3, 4  ;;  %s198_s6 = scalar_lea.sflag [#allocation6], %s843_s3 }
  0x25   : > { %s201_s8 = scalar_lea.vmem [#allocation5], %s483_s25 }
  0x26   : > { %701 = dma.done.wait (%p798_p8), %s198_s6, 256  }
  0x27   : > { %703 = vsyncadd (%p798_p8), %s198_s6, 4294967040  ;;  %vm245_vm0 = vcmask 130048   ;;  %v231_v0 = vld [vmem:[%s847_s7] sm:$0xff]  ;;  %v233_v1 = vld [vmem:[%s847_s7 + $0x10] sm:$0xff]  ;;  %s492_s21 = sshll.u32 %s722_s12, 4  ;;  %s227_s15 = scalar_lea.vmem [#allocation7], %s483_s25 }
  0x28   : > { %v235_v2 = vld [vmem:[%s847_s7 + $0x20] sm:$0xff]  ;;  %v237_v3 = vld [vmem:[%s847_s7 + $0x30] sm:$0xff]  ;;  %v246_v5 = vsel %vm245_vm0, %v231_v0, -inf  ;;  %v247_v6 = vsel %vm245_vm0, %v233_v1, -inf  ;;  %v232_v11 = vld [vmem:[%s847_s7 + $0x8] sm:$0xff]  ;;  %s354_s20 = scalar_lea.hbm %s977_s2, %s492_s21  ;;  %s355_s26 = sshll.u32 %s227_s15, 4  ;;  %s356_s26 = int_to_ptr.vmem [resolvable:$true] %s355_s26 }
  0x29   : > { %v865_v4 = vld [vmem:[%s201_s8] sm:$0xff]  ;;  %v248_v7 = vsel %vm245_vm0, %v235_v2, -inf  ;;  %v250_v9 = vsel %vm245_vm0, %v237_v3, -inf  ;;  %v874_v12 = vld [vmem:[%s847_s7 + $0x28] sm:$0xff]  ;;  %v234_v14 = vld [vmem:[%s847_s7 + $0x18] sm:$0xff]  ;;  %v253_v16 = vsel %vm245_vm0, %v232_v11, -inf }
  0x2a   : > { %v249_v8 = vmax.f32 %v246_v5, %v248_v7  ;;  %vm241_vm1 = vcmp.ne.s32.totalorder %v865_v4, 255  ;;  %v251_v10 = vmax.f32 %v247_v6, %v250_v9  ;;  %v255_v17 = vsel %vm245_vm0, %v874_v12, -inf  ;;  %v890_v22 = vld [vmem:[%s847_s7 + $0x38] sm:$0xff]  ;;  %s357_s19 = sshll.u32 %s354_s20, 4  ;;  %s341_s12 = scalar_lea.sflag [#allocation4], %s843_s3  ;;  %s358_s19 = int_to_ptr.hbm [resolvable:$true] %s357_s19 }
  0x2b   : > { %v243_v15 = vsel %vm241_vm1, %v865_v4, 0  ;;  %v892_v23 = vld [vmem:[%s201_s8 + $0x8] sm:$0xff]  ;;  %v254_v24 = vsel %vm245_vm0, %v234_v14, -inf  ;;  %v256_v28 = vmax.f32 %v253_v16, %v255_v17  ;;  %v257_v30 = vsel %vm245_vm0, %v890_v22, -inf  ;;  %s658_s27 = sshra.s32 %s358_s19, 4  ;;  %s664_s4 = scalar_lea.hbm %s977_s2, 32  ;;  %s659_s27 = int_to_ptr.hbm [resolvable:$true] %s658_s27 }
  0x2c   : > { %v876_v13 = vmax.f32 %v249_v8, %v251_v10  ;;  %vm298_vm2 = vcmp.eq.s32.totalorder %v243_v15, 0  ;;  %vm300_vm3 = vcmp.eq.s32.totalorder %v243_v15, 1  ;;  %vm242_vm4 = vcmp.ne.s32.totalorder %v892_v23, 255  ;;  %s660_s28 = scalar_lea.hbm %s659_s27, 16  ;;  %p665_p7 = scmp.lt.s32.totalorder %s659_s27, %s977_s2 }
  0x2d   : > { %v258_v31 = vmax.f32 %v254_v24, %v257_v30  ;;  %vm302_vm5 = vcmp.eq.s32.totalorder %v243_v15, 2  ;;  %v306_v32 = vsel %vm298_vm2, %v231_v0, 0.0  ;;  %v308_v33 = vsel %vm300_vm3, %v233_v1, 0.0  ;;  %p661_p4 = scmp.ne.s32.totalorder %s659_s27, %s660_s28  ;;  %p666_p8 = scmp.lt.s32.totalorder %s664_s4, %s660_s28 }
  0x2e   : > { %v260_v18 = vsub.f32 %v231_v0, %v876_v13  ;;  %v262_v19 = vsub.f32 %v233_v1, %v876_v13  ;;  %v264_v20 = vsub.f32 %v235_v2, %v876_v13  ;;  %v266_v21 = vsub.f32 %v237_v3, %v876_v13 }
  0x2f   : > { %v898_v34 = vmax.f32 %v256_v28, %v258_v31  ;;  %v244_v35 = vsel %vm242_vm4, %v892_v23, 0  ;;  %vm304_vm6 = vcmp.eq.s32.totalorder %v243_v15, 3  ;;  %v310_v40 = vsel %vm302_vm5, %v235_v2, 0.0  ;;  %p662_p5 = pnand %p661_p4, %p802_p9  ;;  %p667_p10 = por %p666_p8, %p665_p7 }
  0x30   : > { %v268_v25 = vmul.f32 1.442695, %v260_v18  ;;  %v272_v26 = vmul.f32 1.442695, %v262_v19  ;;  %v276_v27 = vmul.f32 1.442695, %v264_v20 }
  0x31   : > { %v280_v29 = vmul.f32 1.442695, %v266_v21  ;;  %v261_v36 = vsub.f32 %v232_v11, %v898_v34  ;;  %v263_v37 = vsub.f32 %v234_v14, %v898_v34  ;;  %v265_v38 = vsub.f32 %v874_v12, %v898_v34  ;;  %p663_p6 = pneg %p662_p5 }
  0x32   : > { %564 = vpow2.f32 %v268_v25  ;;  %v267_v39 = vsub.f32 %v890_v22, %v898_v34  ;;  %v314_v41 = vsel %vm245_vm0, %v306_v32, 0.0  ;;  %v315_v42 = vsel %vm245_vm0, %v308_v33, 0.0 }
  0x33   : > { %566 = vpow2.f32 %v272_v26  ;;  %v270_v44 = vmul.f32 1.442695, %v261_v36  ;;  %v274_v45 = vmul.f32 1.442695, %v263_v37  ;;  %v278_v46 = vmul.f32 1.442695, %v265_v38  ;;  %p668_p13 = pnand %p667_p10, %p663_p6 }
  0x34   : > { %568 = vpow2.f32 %v276_v27  ;;  %v282_v49 = vmul.f32 1.442695, %v267_v39  ;;  %vm299_vm7 = vcmp.eq.s32.totalorder %v244_v35, 0  ;;  %vm301_vm8 = vcmp.eq.s32.totalorder %v244_v35, 1 }
  0x35   : > { %570 = vpow2.f32 %v280_v29  ;;  %v312_v52 = vsel %vm304_vm6, %v237_v3, 0.0  ;;  %v316_v53 = vadd.f32 %v315_v42, %v314_v41  ;;  %v317_v57 = vsel %vm245_vm0, %v310_v40, 0.0 }
  0x36   : > { %572 = vpow2.f32 %v270_v44  ;;  %v307_v59 = vsel %vm299_vm7, %v232_v11, 0.0  ;;  %v309_v60 = vsel %vm301_vm8, %v234_v14, 0.0  ;;  %vm303_vm9 = vcmp.eq.s32.totalorder %v244_v35, 2 }
  0x37   : > { %574 = vpow2.f32 %v274_v45  ;;  %v318_v62 = vadd.f32 %v317_v57, %v316_v53  ;;  %v319_v0 = vsel %vm245_vm0, %v312_v52, 0.0  ;;  %v321_v1 = vsel %vm245_vm0, %v307_v59, 0.0 }
  0x38   : > { %v565_v43 = vpop.eup %564  ;;  %576 = vpow2.f32 %v278_v46  ;;  %v322_v2 = vsel %vm245_vm0, %v309_v60, 0.0  ;;  %v311_v5 = vsel %vm303_vm9, %v874_v12, 0.0  ;;  %vm305_vm10 = vcmp.eq.s32.totalorder %v244_v35, 3 }
  0x39   : > { %v567_v47 = vpop.eup %566  ;;  %v284_v48 = vsel %vm245_vm0, %v565_v43, 0.0  ;;  %578 = vpow2.f32 %v282_v49  ;;  %v320_v9 = vadd.f32 %v319_v0, %v318_v62  ;;  %v323_v11 = vadd.f32 %v322_v2, %v321_v1 }
  0x3a   : > { %v569_v50 = vpop.eup %568  ;;  %v285_v51 = vsel %vm245_vm0, %v567_v47, 0.0  ;;  %v324_v17 = vsel %vm245_vm0, %v311_v5, 0.0  ;;  %v313_v18 = vsel %vm305_vm10, %v890_v22, 0.0 }
  0x3b   : > { %v571_v54 = vpop.eup %570  ;;  %v286_v55 = vadd.f32 %v285_v51, %v284_v48  ;;  %v287_v56 = vsel %vm245_vm0, %v569_v50, 0.0  ;;  %v332_v20 = vsub.f32 %v320_v9, %v876_v13  ;;  %v325_v21 = vadd.f32 %v324_v17, %v323_v11 }
  0x3c   : > { %v289_v58 = vsel %vm245_vm0, %v571_v54, 0.0  ;;  %v573_v3 = vpop.eup %572  ;;  %v326_v26 = vsel %vm245_vm0, %v313_v18, 0.0 }
  0x3d   : > { %v288_v61 = vadd.f32 %v287_v56, %v286_v55  ;;  %v575_v6 = vpop.eup %574  ;;  %v291_v7 = vsel %vm245_vm0, %v573_v3, 0.0  ;;  %v327_v29 = vadd.f32 %v326_v26, %v325_v21 }
  0x3e   : > { %v577_v8 = vpop.eup %576  ;;  %v292_v10 = vsel %vm245_vm0, %v575_v6, 0.0 }
  0x3f   : > { %v290_v63 = vadd.f32 %v289_v58, %v288_v61  ;;  %v579_v14 = vpop.eup %578  ;;  %v293_v15 = vadd.f32 %v292_v10, %v291_v7  ;;  %v294_v16 = vsel %vm245_vm0, %v577_v8, 0.0  ;;  %v333_v13 = vsub.f32 %v327_v29, %v898_v34 }
  0x40   : > { %v296_v12 = vsel %vm245_vm0, %v579_v14, 0.0 }
  0x41   : > { %580 = vlog2.f32 %v290_v63  ;;  %v295_v19 = vadd.f32 %v294_v16, %v293_v15 }
  0x43   : > { %v297_v25 = vadd.f32 %v296_v12, %v295_v19 }
  0x45   : > { %582 = vlog2.f32 %v297_v25 }
  0x47   : > { %v581_v24 = vpop.eup %580 }
  0x48   : > { %v329_v27 = vmul.f32 0.6931472, %v581_v24 }
  0x4a   : > { %v334_v28 = vsub.f32 %v329_v27, %v332_v20 }
  0x4b   : > { %v583_v22 = vpop.eup %582 }
  0x4c   : > { %v336_v30 = vsel %vm241_vm1, %v334_v28, 0.0  ;;  %v331_v31 = vmul.f32 0.6931472, %v583_v22 }
  0x4d   : > { %338 = vst.msk [vmem:[%s227_s15] sm:$0xff] %vm245_vm0, %v336_v30 }
  0x4e   : > { %v335_v32 = vsub.f32 %v331_v31, %v333_v13 }
  0x50   : > { %v337_v4 = vsel %vm242_vm4, %v335_v32, 0.0 }
  0x51   : > { %339 = vst.msk [vmem:[%s227_s15 + $0x8] sm:$0xff] %vm245_vm0, %v337_v4 }
  0x52   : > { %671 = shalt.err (!%p668_p13)
}
  0x53   : > { %s734_s3 = smov 128   ;;  %s735_s25 = smov 8  }
  0x54   : > { %497 = dma.vmem_to_hbm [thread:$0]  (%p802_p9), %s356_s26, 256, %s358_s19, %s341_s12, %s734_s3, %s734_s3, %s735_s25  }
  0x55 PF: > { %s372_s6 = sand.u32 1, %s710_s9   ;;  %p507_p0 = pnand %p474_p12, %p809_p11 }
  0x56   : > { %s373_s8 = scalar_lea.sflag [#allocation4], %s372_s6 }
  0x57   : > { %p508_p1 = pneg %p507_p0 }
  0x59   : > { %705 = dma.done.wait (%p508_p1), %s373_s8, 256  }
  0x5a   : > { %707 = vsyncadd (%p508_p1), %s373_s8, 4294967040  ;;  %s21_s14 = sadd.s32 1, %s730_s14   ;;  %s983_s9 = smov %s714_s10 }
  0x5b   : > { %p18_p2 = scmp.ge.s32.totalorder %s21_s14, 4   ;;  %s984_s10 = smov %s718_s11 }
  0x5c   : > { %s985_s11 = smov %s807_s23  ;;  %s986_s12 = smov %s726_s13 }
  0x5d   : > { %s987_s13 = smov %s989_s17  ;;  %20 = sbr.rel (!%p18_p2) target bundleno = 8 (0x8), region = 86 }
  0x62   :  { %379 = vsyncpa [#allocation3], 1 }
  0x63   :  { %381 = vsyncpa [#allocation3 + $0x1], 1 }
  0x64   :  { %382 = vsyncpa [#allocation6], 1 }
  0x65   :  { %384 = vsyncpa [#allocation6 + $0x1], 1 }
  0x66   :  { %385 = vsyncpa [#allocation4], 1 }
  0x67   :  { %387 = vsyncpa [#allocation4 + $0x1], 1 }

</bundles_post_ra>
